<compile_context>
chip_gen: v5e
topology: v5e:2x2
jax: 0.10.0
libtpu: 0.0.40
codegen_flags: <defaults>
</compile_context>

<pallas_src>
import jax
import jax.numpy as jnp
from jax.experimental import pallas as pl
from jax.experimental.pallas import tpu as pltpu

INPUT_DIM = 2                             # per block
N_BLOCKS = 3
FEATURES = INPUT_DIM * N_BLOCKS           # 6
HIDDEN_DIM = 16
FUSED_HIDDEN = HIDDEN_DIM * N_BLOCKS      # 48
OUTPUT_DIM = 1                            # per block
FUSED_OUT = OUTPUT_DIM * N_BLOCKS         # 3

MAX_TILE_ROWS = 512                       # rows per grid step (mult. of 8)


def _round_up(n, m):
    return ((n + m - 1) // m) * m


def _fused_kernel(x_ref, w1_ref, b1_ref, w2_ref, b2_ref, o_ref):
    # x_ref: (T, 6), w1_ref: (6, 48), b1_ref: (1, 48),
    # w2_ref: (48, 3), b2_ref: (1, 3), o_ref: (T, 3)
    x = x_ref[...]
    w1 = w1_ref[...]
    # Layer 1: K=6 contraction as broadcast FMAs on the VPU (a 6x48 matmul
    # would use <1% of the MXU and only add vmatmul/result-FIFO latency).
    # Bias b1 is folded into the accumulator init.
    acc = x[:, 0:1] * w1[0:1, :] + b1_ref[...]
    for k in range(1, FEATURES):                       # static unroll, 6 taps
        acc = acc + x[:, k:k + 1] * w1[k:k + 1, :]
    h = jnp.maximum(acc, 0.0)
    # Layer 2: (T, 48) @ (48, 3) on the MXU, f32 accumulation.
    out = jnp.dot(h, w2_ref[...], preferred_element_type=jnp.float32)
    o_ref[...] = out + b2_ref[...]


def _fused_forward(x, w1f, b1f, w2f, b2f):
    b_pad = x.shape[0]
    tile = min(MAX_TILE_ROWS, b_pad)                   # b_pad % tile == 0
    grid = (b_pad // tile,)
    flops = 2 * b_pad * (FEATURES * FUSED_HIDDEN + FUSED_HIDDEN * FUSED_OUT)
    bytes_accessed = 4 * (
        b_pad * (FEATURES + FUSED_OUT)
        + FEATURES * FUSED_HIDDEN + FUSED_HIDDEN
        + FUSED_HIDDEN * FUSED_OUT + FUSED_OUT)
    return pl.pallas_call(
        _fused_kernel,
        out_shape=jax.ShapeDtypeStruct((b_pad, FUSED_OUT), jnp.float32),
        grid=grid,
        in_specs=[
            pl.BlockSpec((tile, FEATURES), lambda i: (i, 0)),          # x tile
            pl.BlockSpec((FEATURES, FUSED_HIDDEN), lambda i: (0, 0)),  # W1 full
            pl.BlockSpec((1, FUSED_HIDDEN), lambda i: (0, 0)),         # b1 full
            pl.BlockSpec((FUSED_HIDDEN, FUSED_OUT), lambda i: (0, 0)), # W2 full
            pl.BlockSpec((1, FUSED_OUT), lambda i: (0, 0)),            # b2 full
        ],
        out_specs=pl.BlockSpec((tile, FUSED_OUT), lambda i: (i, 0)),
        compiler_params=pltpu.CompilerParams(
            dimension_semantics=("parallel",),          # 2 TCs on v7x
            vmem_limit_bytes=32 * 1024 * 1024,          # safe on v5e/v6e/v7x
        ),
        cost_estimate=pl.CostEstimate(
            flops=flops, transcendentals=0, bytes_accessed=bytes_accessed),
    )(x, w1f, b1f, w2f, b2f)


@jax.jit
def splitted_model_forward(x, w1f, b1f, w2f, b2f):
    """x: (B, 6) float32 -> (B, 3) float32 (one fused pallas_call)."""
    B, F = x.shape
    assert F == FEATURES, f"expected {FEATURES} input features, got {F}"
    x = x.astype(jnp.float32)
    tile = min(MAX_TILE_ROWS, _round_up(B, 8))
    b_pad = _round_up(B, tile)
    xp = x if b_pad == B else jnp.pad(x, ((0, b_pad - B), (0, 0)))
    out = _fused_forward(xp, w1f, b1f, w2f, b2f)
    return out if b_pad == B else out[:B]


def init_params(key):
    """nn.Linear-style init for block1 (the only block used in forward).
    Weights are stored as (in_features, out_features)."""
    k1, k2, k3, k4 = jax.random.split(key, 4)
    lim1 = 1.0 / jnp.sqrt(jnp.float32(INPUT_DIM))
    lim2 = 1.0 / jnp.sqrt(jnp.float32(HIDDEN_DIM))
    w1 = jax.random.uniform(k1, (INPUT_DIM, HIDDEN_DIM), jnp.float32, -lim1, lim1)
    b1 = jax.random.uniform(k2, (HIDDEN_DIM,), jnp.float32, -lim1, lim1)
    w2 = jax.random.uniform(k3, (HIDDEN_DIM, OUTPUT_DIM), jnp.float32, -lim2, lim2)
    b2 = jax.random.uniform(k4, (OUTPUT_DIM,), jnp.float32, -lim2, lim2)
    return w1, b1, w2, b2


def fuse_block_params(w1, b1, w2, b2):
    """Fold the (0,3)/(1,4)/(2,5) column selection, the shared-block MLP and
    the output concat into block-diagonal fused weights (computed once)."""
    w1f = jnp.zeros((FEATURES, FUSED_HIDDEN), jnp.float32)
    w2f = jnp.zeros((FUSED_HIDDEN, FUSED_OUT), jnp.float32)
    for j in range(N_BLOCKS):
        cols = slice(j * HIDDEN_DIM, (j + 1) * HIDDEN_DIM)
        w1f = w1f.at[j, cols].set(w1[0])               # input col j   -> fc1 in 0
        w1f = w1f.at[j + N_BLOCKS, cols].set(w1[1])    # input col j+3 -> fc1 in 1
        w2f = w2f.at[cols, j].set(w2[:, 0])
    b1f = jnp.tile(b1.reshape(1, HIDDEN_DIM), (1, N_BLOCKS))   # (1, 48)
    b2f = jnp.tile(b2.reshape(1, OUTPUT_DIM), (1, N_BLOCKS))   # (1, 3)
    return w1f, b1f, w2f, b2f


def _reference_forward(x, w1, b1, w2, b2):
    def block(xi):
        h = jnp.maximum(xi @ w1 + b1, 0.0)
        return h @ w2 + b2
    u1 = block(x[:, jnp.array([0, 3])])
    u2 = block(x[:, jnp.array([1, 4])])
    u3 = block(x[:, jnp.array([2, 5])])
    return jnp.concatenate([u1, u2, u3], axis=1)


if __name__ == "__main__":
    key = jax.random.PRNGKey(0)
    kx, kp = jax.random.split(key)

    # Small demo batch, 6 input features (input_dim=2 per block, 3 blocks).
    B = 8
    x = jax.random.normal(kx, (B, FEATURES), jnp.float32)
    w1, b1, w2, b2 = init_params(kp)
    w1f, b1f, w2f, b2f = fuse_block_params(w1, b1, w2, b2)

    out = jax.block_until_ready(splitted_model_forward(x, w1f, b1f, w2f, b2f))
    ref = _reference_forward(x, w1, b1, w2, b2)
    assert out.shape == (B, FUSED_OUT), out.shape
    assert jnp.allclose(out, ref, atol=1e-5, rtol=1e-5), (out, ref)

    # Also exercise the row grid + tail padding with an unaligned batch.
    B2 = 1000
    x2 = jax.random.normal(kx, (B2, FEATURES), jnp.float32)
    out2 = jax.block_until_ready(splitted_model_forward(x2, w1f, b1f, w2f, b2f))
    ref2 = _reference_forward(x2, w1, b1, w2, b2)
    assert out2.shape == (B2, FUSED_OUT), out2.shape
    assert jnp.allclose(out2, ref2, atol=1e-5, rtol=1e-5)

    print("KERNEL_OK")
</pallas_src>

<mosaic_0001>
module attributes {stable_mosaic.version = 11 : i64} {
  func.func @_fused_kernel(%arg0: i32, %arg1: memref<8x6xf32, #tpu.memory_space<vmem>>, %arg2: memref<6x48xf32, #tpu.memory_space<vmem>>, %arg3: memref<1x48xf32, #tpu.memory_space<vmem>>, %arg4: memref<48x3xf32, #tpu.memory_space<vmem>>, %arg5: memref<1x3xf32, #tpu.memory_space<vmem>>, %arg6: memref<8x3xf32, #tpu.memory_space<vmem>>) attributes {dimension_semantics = [#tpu.dimension_semantics<parallel>], iteration_bounds = array<i64: 1>, scalar_prefetch = 0 : i64, scratch_operands = 0 : i64, tpu.core_type = #tpu.core_type<tc>, window_params = [{transform_indices = @transform_0, window_bounds = array<i64: 8, 6>}, {pipeline_mode = #tpu.pipeline_mode<synchronous>, transform_indices = @transform_1, window_bounds = array<i64: 6, 48>}, {pipeline_mode = #tpu.pipeline_mode<synchronous>, transform_indices = @transform_2, window_bounds = array<i64: 1, 48>}, {pipeline_mode = #tpu.pipeline_mode<synchronous>, transform_indices = @transform_3, window_bounds = array<i64: 48, 3>}, {pipeline_mode = #tpu.pipeline_mode<synchronous>, transform_indices = @transform_4, window_bounds = array<i64: 1, 3>}, {transform_indices = @transform_5, window_bounds = array<i64: 8, 3>}]} {
    %c0 = arith.constant 0 : index
    %c0_0 = arith.constant 0 : index
    %0 = vector.load %arg1[%c0, %c0_0] : memref<8x6xf32, #tpu.memory_space<vmem>>, vector<8x6xf32>
    %c0_1 = arith.constant 0 : index
    %c0_2 = arith.constant 0 : index
    %1 = vector.load %arg2[%c0_1, %c0_2] : memref<6x48xf32, #tpu.memory_space<vmem>>, vector<6x48xf32>
    %2 = vector.extract_strided_slice %0 {offsets = [0, 0], sizes = [8, 1], strides = [1, 1]} : vector<8x6xf32> to vector<8x1xf32>
    %3 = vector.extract_strided_slice %1 {offsets = [0, 0], sizes = [1, 48], strides = [1, 1]} : vector<6x48xf32> to vector<1x48xf32>
    %4 = vector.broadcast %2 : vector<8x1xf32> to vector<8x48xf32>
    %5 = vector.broadcast %3 : vector<1x48xf32> to vector<8x48xf32>
    %6 = arith.mulf %4, %5 : vector<8x48xf32>
    %c0_3 = arith.constant 0 : index
    %c0_4 = arith.constant 0 : index
    %7 = vector.load %arg3[%c0_3, %c0_4] : memref<1x48xf32, #tpu.memory_space<vmem>>, vector<1x48xf32>
    %8 = vector.broadcast %7 : vector<1x48xf32> to vector<8x48xf32>
    %9 = arith.addf %6, %8 : vector<8x48xf32>
    %10 = vector.extract_strided_slice %0 {offsets = [0, 1], sizes = [8, 1], strides = [1, 1]} : vector<8x6xf32> to vector<8x1xf32>
    %11 = vector.extract_strided_slice %1 {offsets = [1, 0], sizes = [1, 48], strides = [1, 1]} : vector<6x48xf32> to vector<1x48xf32>
    %12 = vector.broadcast %10 : vector<8x1xf32> to vector<8x48xf32>
    %13 = vector.broadcast %11 : vector<1x48xf32> to vector<8x48xf32>
    %14 = arith.mulf %12, %13 : vector<8x48xf32>
    %15 = arith.addf %9, %14 : vector<8x48xf32>
    %16 = vector.extract_strided_slice %0 {offsets = [0, 2], sizes = [8, 1], strides = [1, 1]} : vector<8x6xf32> to vector<8x1xf32>
    %17 = vector.extract_strided_slice %1 {offsets = [2, 0], sizes = [1, 48], strides = [1, 1]} : vector<6x48xf32> to vector<1x48xf32>
    %18 = vector.broadcast %16 : vector<8x1xf32> to vector<8x48xf32>
    %19 = vector.broadcast %17 : vector<1x48xf32> to vector<8x48xf32>
    %20 = arith.mulf %18, %19 : vector<8x48xf32>
    %21 = arith.addf %15, %20 : vector<8x48xf32>
    %22 = vector.extract_strided_slice %0 {offsets = [0, 3], sizes = [8, 1], strides = [1, 1]} : vector<8x6xf32> to vector<8x1xf32>
    %23 = vector.extract_strided_slice %1 {offsets = [3, 0], sizes = [1, 48], strides = [1, 1]} : vector<6x48xf32> to vector<1x48xf32>
    %24 = vector.broadcast %22 : vector<8x1xf32> to vector<8x48xf32>
    %25 = vector.broadcast %23 : vector<1x48xf32> to vector<8x48xf32>
    %26 = arith.mulf %24, %25 : vector<8x48xf32>
    %27 = arith.addf %21, %26 : vector<8x48xf32>
    %28 = vector.extract_strided_slice %0 {offsets = [0, 4], sizes = [8, 1], strides = [1, 1]} : vector<8x6xf32> to vector<8x1xf32>
    %29 = vector.extract_strided_slice %1 {offsets = [4, 0], sizes = [1, 48], strides = [1, 1]} : vector<6x48xf32> to vector<1x48xf32>
    %30 = vector.broadcast %28 : vector<8x1xf32> to vector<8x48xf32>
    %31 = vector.broadcast %29 : vector<1x48xf32> to vector<8x48xf32>
    %32 = arith.mulf %30, %31 : vector<8x48xf32>
    %33 = arith.addf %27, %32 : vector<8x48xf32>
    %34 = vector.extract_strided_slice %0 {offsets = [0, 5], sizes = [8, 1], strides = [1, 1]} : vector<8x6xf32> to vector<8x1xf32>
    %35 = vector.extract_strided_slice %1 {offsets = [5, 0], sizes = [1, 48], strides = [1, 1]} : vector<6x48xf32> to vector<1x48xf32>
    %36 = vector.broadcast %34 : vector<8x1xf32> to vector<8x48xf32>
    %37 = vector.broadcast %35 : vector<1x48xf32> to vector<8x48xf32>
    %38 = arith.mulf %36, %37 : vector<8x48xf32>
    %39 = arith.addf %33, %38 : vector<8x48xf32>
    %cst = arith.constant 0.000000e+00 : f32
    %40 = vector.broadcast %cst : f32 to vector<8x48xf32>
    %41 = arith.maximumf %39, %40 : vector<8x48xf32>
    %c0_5 = arith.constant 0 : index
    %c0_6 = arith.constant 0 : index
    %42 = vector.load %arg4[%c0_5, %c0_6] : memref<48x3xf32, #tpu.memory_space<vmem>>, vector<48x3xf32>
    %cst_7 = arith.constant dense<0.000000e+00> : vector<8x3xf32>
    %43 = tpu.matmul %41, %42, %cst_7 {dimension_numbers = #tpu.dot_dimension_numbers<[1], [0], [0], [1], [0, 0, 1, 1], [], []>} : vector<8x48xf32>, vector<48x3xf32>, vector<8x3xf32> -> vector<8x3xf32>
    %c0_8 = arith.constant 0 : index
    %c0_9 = arith.constant 0 : index
    %44 = vector.load %arg5[%c0_8, %c0_9] : memref<1x3xf32, #tpu.memory_space<vmem>>, vector<1x3xf32>
    %45 = vector.broadcast %44 : vector<1x3xf32> to vector<8x3xf32>
    %46 = arith.addf %43, %45 : vector<8x3xf32>
    %c0_10 = arith.constant 0 : index
    %c0_11 = arith.constant 0 : index
    %47 = vector.load %arg6[%c0_10, %c0_11] : memref<8x3xf32, #tpu.memory_space<vmem>>, vector<8x3xf32>
    tpu.vector_store %arg6[%c0_10, %c0_11], %46 {strides = array<i32>} : memref<8x3xf32, #tpu.memory_space<vmem>>, vector<8x3xf32>,
    return
  }
  func.func @transform_0(%arg0: i32) -> (i32, i32) {
    %c0_i32 = arith.constant 0 : i32
    %c0_i32_0 = arith.constant 0 : i32
    return %arg0, %c0_i32 : i32, i32
  }
  func.func @transform_1(%arg0: i32) -> (i32, i32) {
    %c0_i32 = arith.constant 0 : i32
    %c0_i32_0 = arith.constant 0 : i32
    %c0_i32_1 = arith.constant 0 : i32
    return %c0_i32, %c0_i32_0 : i32, i32
  }
  func.func @transform_2(%arg0: i32) -> (i32, i32) {
    %c0_i32 = arith.constant 0 : i32
    %c0_i32_0 = arith.constant 0 : i32
    %c0_i32_1 = arith.constant 0 : i32
    return %c0_i32, %c0_i32_0 : i32, i32
  }
  func.func @transform_3(%arg0: i32) -> (i32, i32) {
    %c0_i32 = arith.constant 0 : i32
    %c0_i32_0 = arith.constant 0 : i32
    %c0_i32_1 = arith.constant 0 : i32
    return %c0_i32, %c0_i32_0 : i32, i32
  }
  func.func @transform_4(%arg0: i32) -> (i32, i32) {
    %c0_i32 = arith.constant 0 : i32
    %c0_i32_0 = arith.constant 0 : i32
    %c0_i32_1 = arith.constant 0 : i32
    return %c0_i32, %c0_i32_0 : i32, i32
  }
  func.func @transform_5(%arg0: i32) -> (i32, i32) {
    %c0_i32 = arith.constant 0 : i32
    %c0_i32_0 = arith.constant 0 : i32
    return %arg0, %c0_i32 : i32, i32
  }
}

</mosaic_0001>

<bundles_post_ra>
// kernel: splitted_model_forward.1
= control target key start
LH: loop header
LB: loop body
LE: loop exit
PB: predicated region body
PF: predicated region fallthrough
CT: control target
= control target key end

     0   :  { %v126_v0 = vmov 0   ;;  %v127_v2 = vmov 2   ;;  %v128_v3 = vmov 4   ;;  %v129_v4 = vmov 1   ;;  %s195_s0 = inlined_call_operand.vmem [shape: f32[8,6], index: 0, kind: input, shape index: {}]   ;;  %s196_s2 = inlined_call_operand.vmem [shape: f32[1,48], index: 2, kind: input, shape index: {}]   ;;  %s197_s4 = inlined_call_operand.vmem [shape: f32[1,3], index: 4, kind: input, shape index: {}]   ;;  %s198_s3 = inlined_call_operand.vmem [shape: f32[48,3], index: 3, kind: input, shape index: {}]   ;;  %s199_s1 = inlined_call_operand.vmem [shape: f32[6,48], index: 1, kind: input, shape index: {}]   ;;  %s200_s5 = inlined_call_operand.vmem [shape: f32[8,3], index: 5, kind: output, shape index: {}]  }
   0x1   :  { %117 = vset.pattern.permute.xlu0 %v126_v0  ;;  %v20_v1 = vld [vmem:[%s195_s0] sm:$0xff]  ;;  %119 = vset.pattern.permute.xlu1 %v127_v2  ;;  %v130_v5 = vmov 3   ;;  %v131_v6 = vmov 5   ;;  %v75_v7 = vld [vmem:[%s198_s3 + $0x28] sm:$0xff]  ;;  %v73_v9 = vld [vmem:[%s198_s3 + $0x18] sm:$0xff]  ;;  %vm80_vm0 = vcmask 392192  }
   0x2   :  { %24 = vperm.xlu0 %117, %v20_v1   ;;  %42 = vperm.xlu1 %119, %v20_v1   ;;  %v74_v8 = vld [vmem:[%s198_s3 + $0x20] sm:$0xff]  ;;  %v72_v10 = vld [vmem:[%s198_s3 + $0x10] sm:$0xff]  ;;  %v71_v11 = vld [vmem:[%s198_s3 + $0x8] sm:$0xff]  ;;  %vm104_vm1 = vcmask 23552  }
   0x3   :  { %121 = vset.pattern.permute.xlu2 %v128_v3  ;;  %94 = vmatpush.msra.mxu0 %v75_v7  ;;  %v70_v12 = vld [vmem:[%s198_s3] sm:$0xff] }
   0x4   :  { %56 = vperm.xlu2 %121, %v20_v1   ;;  %v21_v13 = vld [vmem:[%s199_s1] sm:$0x3f] }
   0x5   :  { %95 = vmatpush.msra.mxu0 %v74_v8  ;;  %v27_v16 = vperm.slane %v21_v13, 0  ;;  %v124_v18 = vld [vmem:[%s196_s2] ss:$0 sm:$0xff]  ;;  %v38_v20 = vperm.slane %v21_v13, 1  ;;  %v45_v21 = vperm.slane %v21_v13, 2  ;;  %v52_v22 = vperm.slane %v21_v13, 3 }
   0x6   :  { %v59_v27 = vperm.slane %v21_v13, 4  ;;  %v66_v31 = vperm.slane %v21_v13, 5  ;;  %v125_v40 = vld [vmem:[%s197_s4] ss:$0 sm:$0xff] }
   0x7   :  { %96 = vmatpush.msra.mxu0 %v73_v9 }
   0x9   :  { %97 = vmatpush.msra.mxu0 %v72_v10 }
   0xa   :  { %118 = vset.pattern.permute.xlu0 %v129_v4  ;;  %120 = vset.pattern.permute.xlu1 %v130_v5 }
   0xb   :  { %35 = vperm.xlu0 %118, %v20_v1   ;;  %49 = vperm.xlu1 %120, %v20_v1  }
   0xc   :  { %122 = vset.pattern.permute.xlu2 %v131_v6  ;;  %98 = vmatpush.msra.mxu0 %v71_v11 }
   0xd   :  { %63 = vperm.xlu2 %122, %v20_v1  }
   0xe   :  { %99 = vmatpush.msra.mxu0 %v70_v12 }
  0x13   :  { %123 = vset.pattern.permute.xlu0 %v131_v6 }
  0x5e   :  { %v57_v17 = vpop.permute.xlu2 %56 }
  0x5f   :  { %v60_v34 = vmul.f32 %v59_v27, %v57_v17 }
  0x67   :  { %v64_v32 = vpop.permute.xlu2 %63 }
  0x68   :  { %v67_v36 = vmul.f32 %v66_v31, %v64_v32 }
  0x74   :  { %v25_v14 = vpop.permute.xlu0 %24  ;;  %v43_v15 = vpop.permute.xlu1 %42 }
  0x75   :  { %v28_v19 = vmul.f32 %v27_v16, %v25_v14  ;;  %v46_v28 = vmul.f32 %v45_v21, %v43_v15 }
  0x77   :  { %v33_v25 = vadd.f32 %v124_v18, %v28_v19 }
  0x7d   :  { %v36_v23 = vpop.permute.xlu0 %35  ;;  %v50_v24 = vpop.permute.xlu1 %49 }
  0x7e   :  { %v39_v26 = vmul.f32 %v38_v20, %v36_v23  ;;  %v53_v30 = vmul.f32 %v52_v22, %v50_v24 }
  0x80   :  { %v40_v29 = vadd.f32 %v39_v26, %v33_v25 }
  0x82   :  { %v47_v33 = vadd.f32 %v46_v28, %v40_v29 }
  0x84   :  { %v54_v35 = vadd.f32 %v53_v30, %v47_v33 }
  0x86   :  { %v61_v37 = vadd.f32 %v60_v34, %v54_v35 }
  0x88   :  { %v68_v38 = vadd.f32 %v67_v36, %v61_v37 }
  0x8a   :  { %v69_v39 = vmax.f32 %v68_v38, 0.0 }
  0x8c   :  { %110 = vmatmul.msk.f32.vlgmr.msra.gmra.mxu0 %vm80_vm0, %v69_v39 }
 0x109   :  { %v101_v41 = vpop.f32.mrf.mxu0 }
 0x10a   :  { %v102_v42 = vadd.f32 %v125_v40, %v101_v41 }
 0x10c   :  { %105 = vst.msk [vmem:[%s200_s5] sm:$0xff] %vm104_vm1, %v102_v42 }

</bundles_post_ra>
